<compile_context>
chip_gen: v7x
topology: tpu7x:2x2x1
jax: 0.10.0
libtpu: 0.0.40
codegen_flags: <defaults>
</compile_context>

<pallas_src>
import jax
import jax.numpy as jnp
from jax.experimental import pallas as pl
from jax.experimental.pallas import tpu as pltpu

# ---- model dimensions ------------------------------------------------------
ROBOT_STATE_DIM = 12
PRIV_HIST_DIM = 32
OBS_DIM = ROBOT_STATE_DIM + PRIV_HIST_DIM      # 44
OUT_DIM = 24                                   # forward asserts z4.shape[1] == 24
LATENT_DIM = 64                                # self.latent_space_dimension
H1, H3, H4, H5 = 72, 256, 128, 64

PAD = 128                                      # lane-dense width for <=128-wide tensors
TM = 128                                       # batch rows per grid step (tunable, 128..512)
BATCH = 256                                    # demo batch (2 grid steps -> 2 TCs on v7x)

# ---- packed-weight layout: all K padded to a full lane-dense block ---------
ROW_W1 = 0            # (128,128): rows 12..43 = W1 (priv occupies obs cols 12..43)
ROW_W2 = 128          # (128,128): rows 0..71  = W2
ROW_W4 = 256          # (256,128): rows 0..255 = W4
ROW_W5 = 512          # (128,128): rows 0..127 = W5 (cols 64..127 zero)
ROW_W6 = 640          # (128,128): rows 0..63  = W6 (cols 24..127 zero)
TOTAL_ROWS_A = 768    # wA: bf16 [768, 128]  (~192 KB)
# wB: bf16 [128, 256] fused layer-3 block: rows 0..11 = W3a, rows 16..79 = W3b
STAGE_LAT = 16        # column where latent lands in the layer-3 staging buffer
BIAS_ROWS = 8         # b_packed f32 [8, 256], rows 0..5 = b1..b6 (zero-padded cols)


def _mlp_kernel(obs_ref, wa_ref, w3_ref, b_ref, out_ref, stage_ref):
    # obs block is (TM, 128) with cols 44..127 already zero (wrapper pad).
    x = obs_ref[...].astype(jnp.bfloat16)

    def fc(x_bf16, row, krows, brow, ncols=PAD):
        w = wa_ref[row:row + krows, :]                       # lane-dense bf16 slice
        b = b_ref[brow:brow + 1, :ncols]                     # lane-dense f32 bias
        return jnp.dot(x_bf16, w, preferred_element_type=jnp.float32) + b

    # layer1 + tanh: full-obs x K=128 block (rs rows are zero in the weights)
    a1 = jnp.tanh(fc(x, ROW_W1, PAD, 0))
    # layer2 + tanh -> latent (cols 64..127 are exactly zero)
    latent = jnp.tanh(fc(a1.astype(jnp.bfloat16), ROW_W2, PAD, 1))

    # layer3: fused concat([robot_state, latent]) @ W3 as ONE K=128 matmul.
    # Stage rs at cols 0..11 and latent at cols 16..79; all other columns must
    # be zero (scratch is uninitialized), so clear the buffer each step (cheap).
    stage_ref[...] = jnp.zeros_like(stage_ref)
    stage_ref[:, 0:ROBOT_STATE_DIM] = x[:, 0:ROBOT_STATE_DIM]
    stage_ref[:, STAGE_LAT:STAGE_LAT + LATENT_DIM] = (
        latent[:, :LATENT_DIM].astype(jnp.bfloat16))
    z1 = jnp.tanh(jnp.dot(stage_ref[...], w3_ref[...],
                          preferred_element_type=jnp.float32)
                  + b_ref[2:3, :])                            # (TM, 256)

    # layer4 + tanh
    z2 = jnp.tanh(fc(z1.astype(jnp.bfloat16), ROW_W4, H3, 3))
    # layer5 + tanh
    z3 = jnp.tanh(fc(z2.astype(jnp.bfloat16), ROW_W5, PAD, 4))
    # layer6 (no activation); cols 24..127 are exactly zero
    z4 = fc(z3.astype(jnp.bfloat16), ROW_W6, PAD, 5)

    out_ref[...] = z4                                         # lane-dense (TM, 128) store


def prepare_params(params):
    """One-time packing into lane-dense bf16 weight blocks + one f32 bias buffer."""
    w1, b1, w2, b2, w3, b3, w4, b4, w5, b5, w6, b6 = params

    wa = jnp.zeros((TOTAL_ROWS_A, PAD), jnp.bfloat16)
    # W1 rows aligned with the priv columns of the padded obs vector.
    wa = wa.at[ROW_W1 + ROBOT_STATE_DIM:ROW_W1 + OBS_DIM, :H1].set(
        w1.astype(jnp.bfloat16))
    wa = wa.at[ROW_W2:ROW_W2 + H1, :LATENT_DIM].set(w2.astype(jnp.bfloat16))
    wa = wa.at[ROW_W4:ROW_W4 + H3, :H4].set(w4.astype(jnp.bfloat16))
    wa = wa.at[ROW_W5:ROW_W5 + H4, :H5].set(w5.astype(jnp.bfloat16))
    wa = wa.at[ROW_W6:ROW_W6 + H5, :OUT_DIM].set(w6.astype(jnp.bfloat16))

    # Fused layer-3 block: rows matching the staging-buffer column layout.
    w3b = jnp.zeros((PAD, H3), jnp.bfloat16)
    w3b = w3b.at[0:ROBOT_STATE_DIM, :].set(
        w3[:ROBOT_STATE_DIM, :].astype(jnp.bfloat16))
    w3b = w3b.at[STAGE_LAT:STAGE_LAT + LATENT_DIM, :].set(
        w3[ROBOT_STATE_DIM:, :].astype(jnp.bfloat16))

    bp = jnp.zeros((BIAS_ROWS, H3), jnp.float32)
    for i, b in enumerate((b1, b2, b3, b4, b5, b6)):
        bp = bp.at[i:i + 1, :b.shape[1]].set(b.astype(jnp.float32))

    return wa, w3b, bp


@jax.jit
def custom_network_student_forward(obs, wa, w3b, bp):
    """obs: [B, OBS_DIM] f32 -> (actor, critic), actor == critic."""
    B = obs.shape[0]
    n_blocks = pl.cdiv(B, TM)
    bp_rows = n_blocks * TM
    obs_pad = jnp.pad(obs, ((0, bp_rows - B), (0, PAD - OBS_DIM)))   # zero pad

    flops = 2 * bp_rows * (PRIV_HIST_DIM * H1 + H1 * LATENT_DIM
                           + (ROBOT_STATE_DIM + LATENT_DIM) * H3
                           + H3 * H4 + H4 * H5 + H5 * OUT_DIM)
    transcendentals = bp_rows * (H1 + LATENT_DIM + H3 + H4 + H5)
    bytes_accessed = (obs_pad.size * 4 + wa.size * 2 + w3b.size * 2
                      + bp.size * 4 + bp_rows * PAD * 4)

    out = pl.pallas_call(
        _mlp_kernel,
        grid=(n_blocks,),
        in_specs=[
            pl.BlockSpec((TM, PAD), lambda i: (i, 0)),                 # obs tile
            pl.BlockSpec((TOTAL_ROWS_A, PAD), lambda i: (0, 0)),       # weights (resident)
            pl.BlockSpec((PAD, H3), lambda i: (0, 0)),                 # fused W3 (resident)
            pl.BlockSpec((BIAS_ROWS, H3), lambda i: (0, 0)),           # biases (resident)
        ],
        out_specs=pl.BlockSpec((TM, PAD), lambda i: (i, 0)),
        out_shape=jax.ShapeDtypeStruct((bp_rows, PAD), jnp.float32),
        scratch_shapes=[pltpu.VMEM((TM, PAD), jnp.bfloat16)],          # layer-3 staging
        compiler_params=pltpu.CompilerParams(
            dimension_semantics=("parallel",)),
        cost_estimate=pl.CostEstimate(flops=flops,
                                      transcendentals=transcendentals,
                                      bytes_accessed=bytes_accessed),
    )(obs_pad, wa, w3b, bp)

    z4 = out[:B, :OUT_DIM]
    return z4, z4                         # forward_critic == forward_actor


def init_params(key):
    """Deterministic synthetic parameters. Linear weights stored as (in, out)."""
    dims = [
        (PRIV_HIST_DIM, H1),                      # layer1
        (H1, LATENT_DIM),                         # layer2
        (ROBOT_STATE_DIM + LATENT_DIM, H3),       # layer3
        (H3, H4),                                 # layer4
        (H4, H5),                                 # layer5
        (H5, OUT_DIM),                            # layer6
    ]
    params = []
    for din, dout in dims:
        kw, kb, key = jax.random.split(key, 3)
        scale = 1.0 / jnp.sqrt(jnp.float32(din))
        w = jax.random.normal(kw, (din, dout), jnp.float32) * scale
        b = jax.random.normal(kb, (1, dout), jnp.float32) * 0.01
        params.extend([w, b])
    return tuple(params)


def _reference_bf16(obs, params):
    """Pure-JAX reference with the same bf16-operand / f32-accumulate recipe."""
    w1, b1, w2, b2, w3, b3, w4, b4, w5, b5, w6, b6 = params

    def lin(x, w, b):
        return jnp.dot(x.astype(jnp.bfloat16), w.astype(jnp.bfloat16),
                       preferred_element_type=jnp.float32) + b

    rs, priv = obs[:, :ROBOT_STATE_DIM], obs[:, ROBOT_STATE_DIM:]
    a1 = jnp.tanh(lin(priv, w1, b1))
    lat = jnp.tanh(lin(a1, w2, b2))
    full = jnp.concatenate([rs, lat], axis=-1)
    z = jnp.tanh(lin(full, w3, b3))
    z = jnp.tanh(lin(z, w4, b4))
    z = jnp.tanh(lin(z, w5, b5))
    return lin(z, w6, b6)


def _reference_f32(obs, params):
    w1, b1, w2, b2, w3, b3, w4, b4, w5, b5, w6, b6 = params
    rs, priv = obs[:, :ROBOT_STATE_DIM], obs[:, ROBOT_STATE_DIM:]
    a1 = jnp.tanh(priv @ w1 + b1)
    lat = jnp.tanh(a1 @ w2 + b2)
    full = jnp.concatenate([rs, lat], axis=-1)
    z = jnp.tanh(full @ w3 + b3)
    z = jnp.tanh(z @ w4 + b4)
    z = jnp.tanh(z @ w5 + b5)
    return z @ w6 + b6


if __name__ == "__main__":
    key = jax.random.PRNGKey(0)
    k_obs, k_par = jax.random.split(key)
    obs = jax.random.normal(k_obs, (BATCH, OBS_DIM), jnp.float32)
    params = init_params(k_par)

    wa, w3b, bp = prepare_params(params)          # one-time packing

    actor, critic = custom_network_student_forward(obs, wa, w3b, bp)
    jax.block_until_ready((actor, critic))

    assert actor.shape == (BATCH, OUT_DIM) and critic.shape == (BATCH, OUT_DIM)

    ref_bf16 = _reference_bf16(obs, params)       # same bf16-operand recipe
    ref_f32 = _reference_f32(obs, params)         # original f32 module semantics

    assert jnp.allclose(actor, ref_bf16, atol=5e-3, rtol=5e-3), \
        "actor mismatch vs bf16 reference"
    assert jnp.allclose(critic, ref_bf16, atol=5e-3, rtol=5e-3), \
        "critic mismatch vs bf16 reference"
    # loose check against the exact f32 forward pass (bf16 weight quantization)
    assert jnp.max(jnp.abs(actor - ref_f32)) < 1e-1, \
        "actor drifted too far from f32 reference"

    print("KERNEL_OK")
</pallas_src>

<mosaic_0001>
module attributes {stable_mosaic.version = 11 : i64} {
  func.func @_mlp_kernel(%arg0: i32, %arg1: memref<128x128xf32, #tpu.memory_space<vmem>>, %arg2: memref<768x128xbf16, #tpu.memory_space<vmem>>, %arg3: memref<128x256xbf16, #tpu.memory_space<vmem>>, %arg4: memref<8x256xf32, #tpu.memory_space<vmem>>, %arg5: memref<128x128xf32, #tpu.memory_space<vmem>>, %arg6: memref<128x128xbf16, #tpu.memory_space<vmem>>) attributes {dimension_semantics = [#tpu.dimension_semantics<parallel>], iteration_bounds = array<i64: 2>, scalar_prefetch = 0 : i64, scratch_operands = 1 : i64, tpu.core_type = #tpu.core_type<tc>, window_params = [{transform_indices = @transform_0, window_bounds = array<i64: 128, 128>}, {pipeline_mode = #tpu.pipeline_mode<synchronous>, transform_indices = @transform_1, window_bounds = array<i64: 768, 128>}, {pipeline_mode = #tpu.pipeline_mode<synchronous>, transform_indices = @transform_2, window_bounds = array<i64: 128, 256>}, {pipeline_mode = #tpu.pipeline_mode<synchronous>, transform_indices = @transform_3, window_bounds = array<i64: 8, 256>}, {transform_indices = @transform_4, window_bounds = array<i64: 128, 128>}]} {
    %c0 = arith.constant 0 : index
    %c0_0 = arith.constant 0 : index
    %0 = vector.load %arg1[%c0, %c0_0] : memref<128x128xf32, #tpu.memory_space<vmem>>, vector<128x128xf32>
    %1 = arith.truncf %0 : vector<128x128xf32> to vector<128x128xbf16>
    %c0_1 = arith.constant 0 : index
    %c0_2 = arith.constant 0 : index
    %2 = vector.load %arg2[%c0_1, %c0_2] : memref<768x128xbf16, #tpu.memory_space<vmem>>, vector<128x128xbf16>
    %c0_3 = arith.constant 0 : index
    %c0_4 = arith.constant 0 : index
    %3 = vector.load %arg4[%c0_3, %c0_4] : memref<8x256xf32, #tpu.memory_space<vmem>>, vector<1x128xf32>
    %cst = arith.constant dense<0.000000e+00> : vector<128x128xf32>
    %4 = tpu.matmul %1, %2, %cst {dimension_numbers = #tpu.dot_dimension_numbers<[1], [0], [0], [1], [0, 0, 1, 1], [], []>} : vector<128x128xbf16>, vector<128x128xbf16>, vector<128x128xf32> -> vector<128x128xf32>
    %5 = vector.broadcast %3 : vector<1x128xf32> to vector<128x128xf32>
    %6 = arith.addf %4, %5 : vector<128x128xf32>
    %7 = math.tanh %6 : vector<128x128xf32>
    %8 = arith.truncf %7 : vector<128x128xf32> to vector<128x128xbf16>
    %c128 = arith.constant 128 : index
    %c0_5 = arith.constant 0 : index
    %9 = vector.load %arg2[%c128, %c0_5] : memref<768x128xbf16, #tpu.memory_space<vmem>>, vector<128x128xbf16>
    %c1 = arith.constant 1 : index
    %c0_6 = arith.constant 0 : index
    %10 = vector.load %arg4[%c1, %c0_6] : memref<8x256xf32, #tpu.memory_space<vmem>>, vector<1x128xf32>
    %cst_7 = arith.constant dense<0.000000e+00> : vector<128x128xf32>
    %11 = tpu.matmul %8, %9, %cst_7 {dimension_numbers = #tpu.dot_dimension_numbers<[1], [0], [0], [1], [0, 0, 1, 1], [], []>} : vector<128x128xbf16>, vector<128x128xbf16>, vector<128x128xf32> -> vector<128x128xf32>
    %12 = vector.broadcast %10 : vector<1x128xf32> to vector<128x128xf32>
    %13 = arith.addf %11, %12 : vector<128x128xf32>
    %14 = math.tanh %13 : vector<128x128xf32>
    %cst_8 = arith.constant 0.000000e+00 : bf16
    %15 = vector.broadcast %cst_8 : bf16 to vector<128x128xbf16>
    %c0_9 = arith.constant 0 : index
    %c0_10 = arith.constant 0 : index
    %16 = vector.load %arg6[%c0_9, %c0_10] : memref<128x128xbf16, #tpu.memory_space<vmem>>, vector<128x128xbf16>
    tpu.vector_store %arg6[%c0_9, %c0_10], %15 {strides = array<i32>} : memref<128x128xbf16, #tpu.memory_space<vmem>>, vector<128x128xbf16>,
    %17 = vector.extract_strided_slice %1 {offsets = [0, 0], sizes = [128, 12], strides = [1, 1]} : vector<128x128xbf16> to vector<128x12xbf16>
    %c0_11 = arith.constant 0 : index
    %c0_12 = arith.constant 0 : index
    %18 = vector.load %arg6[%c0_11, %c0_12] : memref<128x128xbf16, #tpu.memory_space<vmem>>, vector<128x12xbf16>
    tpu.vector_store %arg6[%c0_11, %c0_12], %17 {strides = array<i32>} : memref<128x128xbf16, #tpu.memory_space<vmem>>, vector<128x12xbf16>,
    %19 = vector.extract_strided_slice %14 {offsets = [0, 0], sizes = [128, 64], strides = [1, 1]} : vector<128x128xf32> to vector<128x64xf32>
    %20 = arith.truncf %19 : vector<128x64xf32> to vector<128x64xbf16>
    %c0_13 = arith.constant 0 : index
    %c16 = arith.constant 16 : index
    %21 = vector.load %arg6[%c0_13, %c16] : memref<128x128xbf16, #tpu.memory_space<vmem>>, vector<128x64xbf16>
    tpu.vector_store %arg6[%c0_13, %c16], %20 {strides = array<i32>} : memref<128x128xbf16, #tpu.memory_space<vmem>>, vector<128x64xbf16>,
    %c0_14 = arith.constant 0 : index
    %c0_15 = arith.constant 0 : index
    %22 = vector.load %arg6[%c0_14, %c0_15] : memref<128x128xbf16, #tpu.memory_space<vmem>>, vector<128x128xbf16>
    %c0_16 = arith.constant 0 : index
    %c0_17 = arith.constant 0 : index
    %23 = vector.load %arg3[%c0_16, %c0_17] : memref<128x256xbf16, #tpu.memory_space<vmem>>, vector<128x256xbf16>
    %cst_18 = arith.constant dense<0.000000e+00> : vector<128x256xf32>
    %24 = tpu.matmul %22, %23, %cst_18 {dimension_numbers = #tpu.dot_dimension_numbers<[1], [0], [0], [1], [0, 0, 1, 1], [], []>} : vector<128x128xbf16>, vector<128x256xbf16>, vector<128x256xf32> -> vector<128x256xf32>
    %c2 = arith.constant 2 : index
    %c0_19 = arith.constant 0 : index
    %25 = vector.load %arg4[%c2, %c0_19] : memref<8x256xf32, #tpu.memory_space<vmem>>, vector<1x256xf32>
    %26 = vector.broadcast %25 : vector<1x256xf32> to vector<128x256xf32>
    %27 = arith.addf %24, %26 : vector<128x256xf32>
    %28 = math.tanh %27 : vector<128x256xf32>
    %29 = arith.truncf %28 : vector<128x256xf32> to vector<128x256xbf16>
    %c256 = arith.constant 256 : index
    %c0_20 = arith.constant 0 : index
    %30 = vector.load %arg2[%c256, %c0_20] : memref<768x128xbf16, #tpu.memory_space<vmem>>, vector<256x128xbf16>
    %c3 = arith.constant 3 : index
    %c0_21 = arith.constant 0 : index
    %31 = vector.load %arg4[%c3, %c0_21] : memref<8x256xf32, #tpu.memory_space<vmem>>, vector<1x128xf32>
    %cst_22 = arith.constant dense<0.000000e+00> : vector<128x128xf32>
    %32 = tpu.matmul %29, %30, %cst_22 {dimension_numbers = #tpu.dot_dimension_numbers<[1], [0], [0], [1], [0, 0, 1, 1], [], []>} : vector<128x256xbf16>, vector<256x128xbf16>, vector<128x128xf32> -> vector<128x128xf32>
    %33 = vector.broadcast %31 : vector<1x128xf32> to vector<128x128xf32>
    %34 = arith.addf %32, %33 : vector<128x128xf32>
    %35 = math.tanh %34 : vector<128x128xf32>
    %36 = arith.truncf %35 : vector<128x128xf32> to vector<128x128xbf16>
    %c512 = arith.constant 512 : index
    %c0_23 = arith.constant 0 : index
    %37 = vector.load %arg2[%c512, %c0_23] : memref<768x128xbf16, #tpu.memory_space<vmem>>, vector<128x128xbf16>
    %c4 = arith.constant 4 : index
    %c0_24 = arith.constant 0 : index
    %38 = vector.load %arg4[%c4, %c0_24] : memref<8x256xf32, #tpu.memory_space<vmem>>, vector<1x128xf32>
    %cst_25 = arith.constant dense<0.000000e+00> : vector<128x128xf32>
    %39 = tpu.matmul %36, %37, %cst_25 {dimension_numbers = #tpu.dot_dimension_numbers<[1], [0], [0], [1], [0, 0, 1, 1], [], []>} : vector<128x128xbf16>, vector<128x128xbf16>, vector<128x128xf32> -> vector<128x128xf32>
    %40 = vector.broadcast %38 : vector<1x128xf32> to vector<128x128xf32>
    %41 = arith.addf %39, %40 : vector<128x128xf32>
    %42 = math.tanh %41 : vector<128x128xf32>
    %43 = arith.truncf %42 : vector<128x128xf32> to vector<128x128xbf16>
    %c640 = arith.constant 640 : index
    %c0_26 = arith.constant 0 : index
    %44 = vector.load %arg2[%c640, %c0_26] : memref<768x128xbf16, #tpu.memory_space<vmem>>, vector<128x128xbf16>
    %c5 = arith.constant 5 : index
    %c0_27 = arith.constant 0 : index
    %45 = vector.load %arg4[%c5, %c0_27] : memref<8x256xf32, #tpu.memory_space<vmem>>, vector<1x128xf32>
    %cst_28 = arith.constant dense<0.000000e+00> : vector<128x128xf32>
    %46 = tpu.matmul %43, %44, %cst_28 {dimension_numbers = #tpu.dot_dimension_numbers<[1], [0], [0], [1], [0, 0, 1, 1], [], []>} : vector<128x128xbf16>, vector<128x128xbf16>, vector<128x128xf32> -> vector<128x128xf32>
    %47 = vector.broadcast %45 : vector<1x128xf32> to vector<128x128xf32>
    %48 = arith.addf %46, %47 : vector<128x128xf32>
    %c0_29 = arith.constant 0 : index
    %c0_30 = arith.constant 0 : index
    %49 = vector.load %arg5[%c0_29, %c0_30] : memref<128x128xf32, #tpu.memory_space<vmem>>, vector<128x128xf32>
    tpu.vector_store %arg5[%c0_29, %c0_30], %48 {strides = array<i32>} : memref<128x128xf32, #tpu.memory_space<vmem>>, vector<128x128xf32>,
    return
  }
  func.func @transform_0(%arg0: i32) -> (i32, i32) {
    %c0_i32 = arith.constant 0 : i32
    %c0_i32_0 = arith.constant 0 : i32
    return %arg0, %c0_i32 : i32, i32
  }
  func.func @transform_1(%arg0: i32) -> (i32, i32) {
    %c0_i32 = arith.constant 0 : i32
    %c0_i32_0 = arith.constant 0 : i32
    %c0_i32_1 = arith.constant 0 : i32
    return %c0_i32, %c0_i32_0 : i32, i32
  }
  func.func @transform_2(%arg0: i32) -> (i32, i32) {
    %c0_i32 = arith.constant 0 : i32
    %c0_i32_0 = arith.constant 0 : i32
    %c0_i32_1 = arith.constant 0 : i32
    return %c0_i32, %c0_i32_0 : i32, i32
  }
  func.func @transform_3(%arg0: i32) -> (i32, i32) {
    %c0_i32 = arith.constant 0 : i32
    %c0_i32_0 = arith.constant 0 : i32
    %c0_i32_1 = arith.constant 0 : i32
    return %c0_i32, %c0_i32_0 : i32, i32
  }
  func.func @transform_4(%arg0: i32) -> (i32, i32) {
    %c0_i32 = arith.constant 0 : i32
    %c0_i32_0 = arith.constant 0 : i32
    return %arg0, %c0_i32 : i32, i32
  }
}

</mosaic_0001>

<bundles_post_ra>
// kernel: custom_network_student_forward.1
= control target key start
LH: loop header
LB: loop body
LE: loop exit
PB: predicated region body
PF: predicated region fallthrough
CT: control target
= control target key end

     0   :  { %s2245_s15 = smov 0   ;;  %s2677_s0 = inlined_call_operand.vmem [shape: f32[256,128], index: 0, kind: input, shape index: {}]   ;;  %s2678_s1 = inlined_call_operand.vmem [shape: bf16[768,128], index: 1, kind: input, shape index: {}]   ;;  %s2679_s2 = inlined_call_operand.vmem [shape: bf16[128,256], index: 2, kind: input, shape index: {}]   ;;  %s2680_s3 = inlined_call_operand.vmem [shape: f32[8,256], index: 3, kind: input, shape index: {}]   ;;  %s2681_s4 = inlined_call_operand.vmem [shape: f32[256,128], index: 4, kind: output, shape index: {}]  }
   0x1 LB: > { %s1604_s16 = sadd.s32 4294967295, %s2216_s15   ;;  %p1608_p0 = scmp.ge.s32.totalorder %s2216_s15, 1  ;;  %s2216_s15 = sphi %s2245_s15, %s14_s15  }
   0x2   : > { %p163_p1 = scmp.lt.s32.totalorder %s2216_s15, 3 }
   0x4   : > { %p164_p2 = pnand %p1608_p0, %p163_p1 }
   0x5   : > { %v1946_v0 = vld [vmem:[%s2678_s1] sm:$0xff] (!%p164_p2)   ;;  %s1609_s19 = sshll.u32 (!%p164_p2), %s1604_s16, 4  ;;  %v1947_v1 = vld [vmem:[%s2678_s1 + $0x8] sm:$0xff] (!%p164_p2)   ;;  %v1948_v2 = vld [vmem:[%s2678_s1 + $0x10] sm:$0xff] (!%p164_p2)   ;;  %vm598_vm0 = vcmask (!%p164_p2), 97280   ;;  %s2219_s20 = smov (!%p164_p2), 16  }
   0x6   : > { %167 = sbr.rel (%p164_p2) target bundleno = 1590 (0x636), region = 36  ;;  %p190_p3 = scmp.lt.s32.totalorder (!%p164_p2), %s1609_s19, 31  ;;  %1808 = vmatprep.subr.bf16.mxu0 (!%p164_p2), %v1946_v0  ;;  %v1949_v3 = vld [vmem:[%s2678_s1 + $0x18] sm:$0xff] (!%p164_p2)   ;;  %v1950_v7 = vld [vmem:[%s2678_s1 + $0x20] sm:$0xff] (!%p164_p2)   ;;  %v1951_v8 = vld [vmem:[%s2678_s1 + $0x28] sm:$0xff] (!%p164_p2)   ;;  %vm647_vm1 = vcmask (!%p164_p2), 654464  }
   0x7   : > { %1809 = vmatpush3.bf16.msra.mxu0 (!%p164_p2), %v1946_v0  ;;  %v1954_v9 = vld [vmem:[%s2678_s1 + $0x40] sm:$0xff] (!%p164_p2)   ;;  %v1955_v10 = vld [vmem:[%s2678_s1 + $0x48] sm:$0xff] (!%p164_p2)   ;;  %v1956_v11 = vld [vmem:[%s2678_s1 + $0x50] sm:$0xff] (!%p164_p2)  }
   0x8   : > { %1810 = vmatprep.subr.bf16.mxu0 (!%p164_p2), %v1947_v1  ;;  %1840 = vmatprep.subr.bf16.mxu1 (!%p164_p2), %v1954_v9  ;;  %v1952_v12 = vld [vmem:[%s2678_s1 + $0x30] sm:$0xff] (!%p164_p2)   ;;  %v1953_v13 = vld [vmem:[%s2678_s1 + $0x38] sm:$0xff] (!%p164_p2)   ;;  %v1958_v36 = vld [vmem:[%s2678_s1 + $0x60] sm:$0xff] (!%p164_p2)  }
   0x9   : > { %1841 = vmatpush3.bf16.msra.mxu1 (!%p164_p2), %v1954_v9  ;;  %v1957_v35 = vld [vmem:[%s2678_s1 + $0x58] sm:$0xff] (!%p164_p2)   ;;  %v1959_v37 = vld [vmem:[%s2678_s1 + $0x68] sm:$0xff] (!%p164_p2)   ;;  %v1960_v38 = vld [vmem:[%s2678_s1 + $0x70] sm:$0xff] (!%p164_p2)  }
   0xa   : > { %1842 = vmatprep.subr.bf16.mxu1 (!%p164_p2), %v1955_v10  ;;  %v1961_v39 = vld [vmem:[%s2678_s1 + $0x78] sm:$0xff] (!%p164_p2)   ;;  %v242_v40 = vld [vmem:[%s2680_s3] ss:$0 sm:$0xff] (!%p164_p2) }
   0xb   : > { %1811 = vmatpush3.bf16.msra.mxu0 (!%p164_p2), %v1947_v1 }
   0xc   : > { %1812 = vmatprep.subr.bf16.mxu0 (!%p164_p2), %v1948_v2 }
   0xd   : > { %s2683_s19 = smov (!%p190_p3, %s1609_s19), 31  ;;  %1843 = vmatpush3.bf16.msra.mxu1 %v1955_v10 }
   0xe   : > { %s1610_s24 = sshll.u32 %s2683_s19, 3  ;;  %1844 = vmatprep.subr.bf16.mxu1 %v1956_v11 }
   0xf   : > { %s2270_s27 = scalar_lea.vmem %s2677_s0, %s1610_s24  ;;  %1813 = vmatpush3.bf16.msra.mxu0 %v1948_v2 }
  0x10   : > { %v202_v4 = vld [vmem:[%s2270_s27] sm:$0xff]  ;;  %v203_v5 = vld [vmem:[%s2270_s27 + $0x8] sm:$0xff]  ;;  %1814 = vmatprep.subr.bf16.mxu0 %v1949_v3  ;;  %v204_v14 = vld [vmem:[%s2270_s27 + $0x10] sm:$0xff] }
  0x11   : > { %v2277_v6 = vpack.c.bf16 %v203_v5, %v202_v4  ;;  %v205_v15 = vld [vmem:[%s2270_s27 + $0x18] sm:$0xff]  ;;  %1845 = vmatpush3.bf16.msra.mxu1 %v1956_v11  ;;  %v206_v16 = vld [vmem:[%s2270_s27 + $0x20] sm:$0xff]  ;;  %v207_v17 = vld [vmem:[%s2270_s27 + $0x28] sm:$0xff] }
  0x12   : > { %v2305_v18 = vpack.c.bf16 %v205_v15, %v204_v14  ;;  %v2307_v19 = vpack.c.bf16 %v207_v17, %v206_v16  ;;  %v208_v20 = vld [vmem:[%s2270_s27 + $0x30] sm:$0xff]  ;;  %v209_v21 = vld [vmem:[%s2270_s27 + $0x38] sm:$0xff]  ;;  %v210_v22 = vld [vmem:[%s2270_s27 + $0x40] sm:$0xff]  ;;  %1846 = vmatprep.subr.bf16.mxu1 %v1957_v35 }
  0x13   : > { %1824 = vmatprep.mubr.bf16.mxu0 %v2277_v6  ;;  %1815 = vmatpush3.bf16.msra.mxu0 %v1949_v3  ;;  %v211_v23 = vld [vmem:[%s2270_s27 + $0x48] sm:$0xff]  ;;  %v2315_v24 = vpack.c.bf16 %v209_v21, %v208_v20  ;;  %v212_v26 = vld [vmem:[%s2270_s27 + $0x50] sm:$0xff]  ;;  %v213_v27 = vld [vmem:[%s2270_s27 + $0x58] sm:$0xff] }
  0x14   : > { %1816 = vmatprep.subr.bf16.mxu0 %v1950_v7  ;;  %v2317_v25 = vpack.c.bf16 %v211_v23, %v210_v22  ;;  %v214_v28 = vld [vmem:[%s2270_s27 + $0x60] sm:$0xff]  ;;  %v215_v29 = vld [vmem:[%s2270_s27 + $0x68] sm:$0xff]  ;;  %v2325_v30 = vpack.c.bf16 %v213_v27, %v212_v26  ;;  %v216_v32 = vld [vmem:[%s2270_s27 + $0x70] sm:$0xff] }
  0x15   : > { %v2327_v31 = vpack.c.bf16 %v215_v29, %v214_v28  ;;  %v217_v33 = vld [vmem:[%s2270_s27 + $0x78] sm:$0xff]  ;;  %1847 = vmatpush3.bf16.msra.mxu1 %v1957_v35  ;;  %s2656_s27 = scalar_lea.vmem %s2681_s4, %s1610_s24 }
  0x16   : > { %v2333_v34 = vpack.c.bf16 %v217_v33, %v216_v32  ;;  %1848 = vmatprep.subr.bf16.mxu1 %v1958_v36 }
  0x17   : > { %1817 = vmatpush3.bf16.msra.mxu0 %v1950_v7 }
  0x18   : > { %1818 = vmatprep.subr.bf16.mxu0 %v1951_v8 }
  0x19   : > { %1849 = vmatpush3.bf16.msra.mxu1 %v1958_v36 }
  0x1a   : > { %1850 = vmatprep.subr.bf16.mxu1 %v1959_v37 }
  0x1b   : > { %1819 = vmatpush3.bf16.msra.mxu0 %v1951_v8 }
  0x1c   : > { %1820 = vmatprep.subr.bf16.mxu0 %v1952_v12 }
  0x1d   : > { %1851 = vmatpush3.bf16.msra.mxu1 %v1959_v37 }
  0x1e   : > { %1852 = vmatprep.subr.bf16.mxu1 %v1960_v38 }
  0x1f   : > { %1821 = vmatpush3.bf16.msra.mxu0 %v1952_v12 }
  0x20   : > { %1822 = vmatprep.subr.bf16.mxu0 %v1953_v13 }
  0x21   : > { %1853 = vmatpush3.bf16.msra.mxu1 %v1960_v38 }
  0x22   : > { %1854 = vmatprep.subr.bf16.mxu1 %v1961_v39 }
  0x23   : > { %1823 = vmatpush3.bf16.msra.mxu0 %v1953_v13 }
  0x25   : > { %1855 = vmatpush3.bf16.msra.mxu1 %v1961_v39 }
  0x26   : > { %1825 = vmatmul.mubr.bf16.vlgmr.msra.gmra.mrb[0].mxu0 %v2305_v18 }
  0x27   : > { %1828 = vmatprep.mubr.bf16.mxu0 %v2307_v19 }
  0x2e   : > { %1829 = vmatmul.mubr.bf16.gmra.mrb[4].mxu0 %v2315_v24 }
  0x2f   : > { %1832 = vmatprep.mubr.bf16.mxu0 %v2317_v25 }
  0x36   : > { %1833 = vmatmul.mubr.bf16.gmra.mrb[8].mxu0 %v2325_v30 }
  0x37   : > { %1836 = vmatprep.mubr.bf16.mxu0 %v2327_v31 }
  0x3e   : > { %1837 = vmatmul.mubr.bf16.gmra.mrb[12].mxu0 %v2333_v34 }
  0xf9   : > { %v1826_v41 = vpop.f32.mrb[0].mxu0 }
  0xfa   : > { %v334_v42 = vadd.f32 %v1826_v41, %v242_v40  ;;  %v325_v43 = vpop.f32.mrb[1].mxu0 }
  0xfb   : > { %v326_v44 = vadd.f32 %v325_v43, %v242_v40  ;;  %v1827_v45 = vpop.f32.mrb[2].mxu0  ;;  %v1967_v43 = vld [vmem:[%s2679_s2 + $0x14] ss:$8 sps:$4 sm:$0xff]  }
  0xfc   : > { %2018 = vtanh.f32 %v334_v42  ;;  %v337_v46 = vadd.f32 %v1827_v45, %v242_v40  ;;  %v328_v47 = vpop.f32.mrb[3].mxu0  ;;  %v1964_v42 = vld [vmem:[%s2679_s2 + $0x4] ss:$8 sps:$4 sm:$0xff]  }
  0xfd   : > { %2020 = vtanh.f32 %v326_v44  ;;  %v329_v48 = vadd.f32 %v328_v47, %v242_v40  ;;  %773 = vmatprep.subr.bf16.mxu0 %v1964_v42  ;;  %v1965_v44 = vld [vmem:[%s2679_s2 + $0x10] ss:$8 sps:$4 sm:$0xff]   ;;  %v1970_v45 = vld [vmem:[%s2679_s2 + $0x24] ss:$8 sps:$4 sm:$0xff]   ;;  %v1980_v47 = vld [vmem:[%s2679_s2 + $0x60] ss:$8 sps:$4 sm:$0xff]  }
  0xfe   : > { %2022 = vtanh.f32 %v337_v46  ;;  %v2218_v46 = vmov 0  }
  0xff   : > { %2024 = vtanh.f32 %v329_v48  ;;  %590 = vst [vmem:[#allocation2] sm:$0xff] %v2218_v46  ;;  %591 = vst [vmem:[#allocation2 + $0x8] sm:$0xff] %v2218_v46  ;;  %805 = vmatprep.mubr.bf16.mxu0 %v2218_v46  ;;  %v2424_v48 = vld [vmem:[%s2680_s3 + $0x1] ss:$0 sm:$0xff] }
 0x100   : > { %592 = vst [vmem:[#allocation2 + $0x10] sm:$0xff] %v2218_v46  ;;  %593 = vst [vmem:[#allocation2 + $0x18] sm:$0xff] %v2218_v46 }
 0x101   : > { %v1830_v49 = vpop.f32.mrb[4].mxu0  ;;  %594 = vst [vmem:[#allocation2 + $0x20] sm:$0xff] %v2218_v46  ;;  %595 = vst [vmem:[#allocation2 + $0x28] sm:$0xff] %v2218_v46 }
 0x102   : > { %v350_v50 = vadd.f32 %v1830_v49, %v242_v40  ;;  %v341_v51 = vpop.f32.mrb[5].mxu0  ;;  %596 = vst [vmem:[#allocation2 + $0x30] sm:$0xff] %v2218_v46  ;;  %597 = vst [vmem:[#allocation2 + $0x38] sm:$0xff] %v2218_v46 }
 0x103   : > { %v342_v52 = vadd.f32 %v341_v51, %v242_v40  ;;  %v1831_v53 = vpop.f32.mrb[6].mxu0  ;;  %599 = vst.msk [vmem:[#allocation2] sm:$0xff] %vm598_vm0, %v2277_v6  ;;  %600 = vst.msk [vmem:[#allocation2 + $0x8] sm:$0xff] %vm598_vm0, %v2305_v18  ;;  %v1968_v6 = vld [vmem:[%s2679_s2 + $0x20] ss:$8 sps:$4 sm:$0xff]  }
 0x104   : > { %2026 = vtanh.f32 %v350_v50  ;;  %v353_v54 = vadd.f32 %v1831_v53, %v242_v40  ;;  %v344_v55 = vpop.f32.mrb[7].mxu0  ;;  %601 = vst.msk [vmem:[#allocation2 + $0x10] sm:$0xff] %vm598_vm0, %v2307_v19  ;;  %602 = vst.msk [vmem:[#allocation2 + $0x18] sm:$0xff] %vm598_vm0, %v2315_v24  ;;  %v1973_v18 = vld [vmem:[%s2679_s2 + $0x34] ss:$8 sps:$4 sm:$0xff]  }
 0x105   : > { %2028 = vtanh.f32 %v342_v52  ;;  %v345_v56 = vadd.f32 %v344_v55, %v242_v40  ;;  %603 = vst.msk [vmem:[#allocation2 + $0x20] sm:$0xff] %vm598_vm0, %v2317_v25  ;;  %604 = vst.msk [vmem:[#allocation2 + $0x28] sm:$0xff] %vm598_vm0, %v2325_v30  ;;  %v1971_v19 = vld [vmem:[%s2679_s2 + $0x30] ss:$8 sps:$4 sm:$0xff]   ;;  %v1976_v24 = vld [vmem:[%s2679_s2 + $0x44] ss:$8 sps:$4 sm:$0xff]  }
 0x106   : > { %v2019_v57 = vpop.eup %2018  ;;  %2030 = vtanh.f32 %v353_v54  ;;  %605 = vst.msk [vmem:[#allocation2 + $0x30] sm:$0xff] %vm598_vm0, %v2327_v31  ;;  %606 = vst.msk [vmem:[#allocation2 + $0x38] sm:$0xff] %vm598_vm0, %v2333_v34  ;;  %v1974_v25 = vld [vmem:[%s2679_s2 + $0x40] ss:$8 sps:$4 sm:$0xff]   ;;  %v1979_v30 = vld [vmem:[%s2679_s2 + $0x54] ss:$8 sps:$4 sm:$0xff]  }
 0x107   : > { %v2021_v58 = vpop.eup %2020  ;;  %2032 = vtanh.f32 %v345_v56  ;;  %v1977_v31 = vld [vmem:[%s2679_s2 + $0x50] ss:$8 sps:$4 sm:$0xff]   ;;  %v1982_v34 = vld [vmem:[%s2679_s2 + $0x64] ss:$8 sps:$4 sm:$0xff]  }
 0x108   : > { %v2023_v59 = vpop.eup %2022 }
 0x109   : > { %v2025_v60 = vpop.eup %2024  ;;  %v405_v61 = vpack.c.bf16 %v2023_v59, %v2019_v57  ;;  %v1834_v62 = vpop.f32.mrb[8].mxu0  ;;  %v1983_v57 = vld [vmem:[%s2679_s2 + $0x70] ss:$8 sps:$4 sm:$0xff]  }
 0x10a   : > { %v404_v63 = vpack.c.bf16 %v2025_v60, %v2021_v58  ;;  %v366_v0 = vadd.f32 %v1834_v62, %v242_v40  ;;  %v357_v1 = vpop.f32.mrb[9].mxu0  ;;  %v1985_v58 = vld [vmem:[%s2679_s2 + $0x74] ss:$8 sps:$4 sm:$0xff]  }
 0x10b   : > { %v358_v2 = vadd.f32 %v357_v1, %v242_v40  ;;  %v1835_v3 = vpop.f32.mrb[10].mxu0 }
 0x10c   : > { %1856 = vmatprep.mubr.bf16.mxu1 %v404_v63  ;;  %2034 = vtanh.f32 %v366_v0  ;;  %v369_v4 = vadd.f32 %v1835_v3, %v242_v40  ;;  %v360_v5 = vpop.f32.mrb[11].mxu0 }
 0x10d   : > { %1857 = vmatmul.mubr.bf16.vlgmr.msra.gmra.mrb[0].mxu1 %v405_v61  ;;  %2036 = vtanh.f32 %v358_v2  ;;  %v361_v7 = vadd.f32 %v360_v5, %v242_v40 }
 0x10e   : > { %v2027_v8 = vpop.eup %2026  ;;  %2038 = vtanh.f32 %v369_v4 }
 0x10f   : > { %v2029_v9 = vpop.eup %2028  ;;  %2040 = vtanh.f32 %v361_v7 }
 0x110   : > { %v2031_v10 = vpop.eup %2030 }
 0x111   : > { %v2033_v11 = vpop.eup %2032  ;;  %v407_v12 = vpack.c.bf16 %v2031_v10, %v2027_v8  ;;  %v1838_v13 = vpop.f32.mrb[12].mxu0 }
 0x112   : > { %v406_v14 = vpack.c.bf16 %v2033_v11, %v2029_v9  ;;  %v382_v15 = vadd.f32 %v1838_v13, %v242_v40  ;;  %v373_v16 = vpop.f32.mrb[13].mxu0 }
 0x113   : > { %v374_v17 = vadd.f32 %v373_v16, %v242_v40  ;;  %v1839_v20 = vpop.f32.mrb[14].mxu0 }
 0x114   : > { %1860 = vmatprep.mubr.bf16.mxu1 %v406_v14  ;;  %2042 = vtanh.f32 %v382_v15  ;;  %v385_v21 = vadd.f32 %v1839_v20, %v242_v40  ;;  %v376_v22 = vpop.f32.mrb[15].mxu0 }
 0x115   : > { %1861 = vmatmul.mubr.bf16.gmra.mrb[4].mxu1 %v407_v12  ;;  %2044 = vtanh.f32 %v374_v17  ;;  %v377_v23 = vadd.f32 %v376_v22, %v242_v40  ;;  %v1962_v40 = vld [vmem:[%s2679_s2] ss:$8 sps:$4 sm:$0xff]  }
 0x116   : > { %v2035_v26 = vpop.eup %2034  ;;  %2046 = vtanh.f32 %v385_v21  ;;  %774 = vmatpush1.bf16.msra.mxu0 %v1962_v40 }
 0x117   : > { %v2037_v27 = vpop.eup %2036  ;;  %2048 = vtanh.f32 %v377_v23  ;;  %775 = vmatprep.subr.bf16.mxu0 %v1967_v43 }
 0x118   : > { %v2039_v28 = vpop.eup %2038 }
 0x119   : > { %v2041_v29 = vpop.eup %2040  ;;  %v409_v32 = vpack.c.bf16 %v2039_v28, %v2035_v26 }
 0x11a   : > { %v408_v33 = vpack.c.bf16 %v2041_v29, %v2037_v27  ;;  %776 = vmatpush1.bf16.msra.mxu0 %v1965_v44 }
 0x11b   : > { %777 = vmatprep.subr.bf16.mxu0 %v1970_v45 }
 0x11c   : > { %1864 = vmatprep.mubr.bf16.mxu1 %v408_v33 }
 0x11d   : > { %1865 = vmatmul.mubr.bf16.gmra.mrb[8].mxu1 %v409_v32 }
 0x11e   : > { %v2043_v35 = vpop.eup %2042  ;;  %778 = vmatpush1.bf16.msra.mxu0 %v1968_v6 }
 0x11f   : > { %v2045_v36 = vpop.eup %2044  ;;  %779 = vmatprep.subr.bf16.mxu0 %v1973_v18 }
 0x120   : > { %v2047_v37 = vpop.eup %2046 }
 0x121   : > { %v2049_v38 = vpop.eup %2048  ;;  %v411_v39 = vpack.c.bf16 %v2047_v37, %v2043_v35 }
 0x122   : > { %v410_v41 = vpack.c.bf16 %v2049_v38, %v2045_v36  ;;  %780 = vmatpush1.bf16.msra.mxu0 %v1971_v19 }
 0x123   : > { %781 = vmatprep.subr.bf16.mxu0 %v1976_v24 }
 0x124   : > { %1868 = vmatprep.mubr.bf16.mxu1 %v410_v41 }
 0x125   : > { %1869 = vmatmul.mubr.bf16.gmra.mrb[12].mxu1 %v411_v39 }
 0x126   : > { %782 = vmatpush1.bf16.msra.mxu0 %v1974_v25 }
 0x127   : > { %783 = vmatprep.subr.bf16.mxu0 %v1979_v30  ;;  %v1986_v30 = vld [vmem:[%s2678_s1 + $0xc0] sm:$0xff]  }
 0x128   : > { %1712 = vmatprep.subr.bf16.mxu1 %v1986_v30 }
 0x12a   : > { %784 = vmatpush1.bf16.msra.mxu0 %v1977_v31  ;;  %v1987_v31 = vld [vmem:[%s2678_s1 + $0x80] sm:$0xff]  }
 0x12b   : > { %785 = vmatprep.subr.bf16.mxu0 %v1982_v34  ;;  %v1988_v34 = vld [vmem:[%s2678_s1 + $0xc8] sm:$0xff]   ;;  %1713 = vmatpush3.bf16.msra.mxu1 %v1987_v31 }
 0x12c   : > { %1714 = vmatprep.subr.bf16.mxu1 %v1988_v34 }
 0x12e   : > { %786 = vmatpush1.bf16.msra.mxu0 %v1980_v47  ;;  %v1989_v47 = vld [vmem:[%s2678_s1 + $0x88] sm:$0xff]  }
 0x12f   : > { %787 = vmatprep.subr.bf16.mxu0 %v1985_v58  ;;  %1715 = vmatpush3.bf16.msra.mxu1 %v1989_v47 }
 0x132   : > { %788 = vmatpush1.bf16.msra.mxu0 %v1983_v57 }
 0x1e0   : > { %v1858_v49 = vpop.f32.mrb[0].mxu1 }
 0x1e1   : > { %v520_v50 = vadd.f32 %v1858_v49, %v2424_v48  ;;  %v511_v51 = vpop.f32.mrb[1].mxu1  ;;  %v1991_v49 = vld [vmem:[%s2678_s1 + $0x90] sm:$0xff]  }
 0x1e2   : > { %v512_v52 = vadd.f32 %v511_v51, %v2424_v48  ;;  %v1859_v53 = vpop.f32.mrb[2].mxu1 }
 0x1e3   : > { %2050 = vtanh.f32 %v520_v50  ;;  %v523_v54 = vadd.f32 %v1859_v53, %v2424_v48  ;;  %v514_v55 = vpop.f32.mrb[3].mxu1  ;;  %v1992_v50 = vld [vmem:[%s2678_s1 + $0xd8] sm:$0xff]  }
 0x1e4   : > { %2052 = vtanh.f32 %v512_v52  ;;  %v515_v56 = vadd.f32 %v514_v55, %v2424_v48 }
 0x1e5   : > { %2054 = vtanh.f32 %v523_v54 }
 0x1e6   : > { %2056 = vtanh.f32 %v515_v56 }
 0x1e8   : > { %v1862_v59 = vpop.f32.mrb[4].mxu1 }
 0x1e9   : > { %v536_v60 = vadd.f32 %v1862_v59, %v2424_v48  ;;  %v527_v61 = vpop.f32.mrb[5].mxu1 }
 0x1ea   : > { %v528_v62 = vadd.f32 %v527_v61, %v2424_v48  ;;  %v1863_v63 = vpop.f32.mrb[6].mxu1 }
 0x1eb   : > { %2058 = vtanh.f32 %v536_v60  ;;  %v539_v0 = vadd.f32 %v1863_v63, %v2424_v48  ;;  %v530_v1 = vpop.f32.mrb[7].mxu1 }
 0x1ec   : > { %2060 = vtanh.f32 %v528_v62  ;;  %v531_v2 = vadd.f32 %v530_v1, %v2424_v48 }
 0x1ed   : > { %v2051_v3 = vpop.eup %2050  ;;  %2062 = vtanh.f32 %v539_v0 }
 0x1ee   : > { %v2053_v4 = vpop.eup %2052  ;;  %2064 = vtanh.f32 %v531_v2 }
 0x1ef   : > { %v2055_v5 = vpop.eup %2054 }
 0x1f0   : > { %v2057_v7 = vpop.eup %2056  ;;  %v608_v8 = vpack.c.bf16 %v2055_v5, %v2051_v3  ;;  %v1866_v9 = vpop.f32.mrb[8].mxu1  ;;  %v1993_v3 = vld [vmem:[%s2678_s1 + $0x98] sm:$0xff]   ;;  %v1995_v5 = vld [vmem:[%s2678_s1 + $0xa0] sm:$0xff]  }
 0x1f1   : > { %v607_v10 = vpack.c.bf16 %v2057_v7, %v2053_v4  ;;  %v552_v11 = vadd.f32 %v1866_v9, %v2424_v48  ;;  %v543_v12 = vpop.f32.mrb[9].mxu1  ;;  %v1994_v4 = vld [vmem:[%s2678_s1 + $0xe0] sm:$0xff]   ;;  %v1997_v7 = vld [vmem:[%s2678_s1 + $0xa8] sm:$0xff]   ;;  %v1999_v9 = vld [vmem:[%s2678_s1 + $0xb0] sm:$0xff]  }
 0x1f2   : > { %v544_v13 = vadd.f32 %v543_v12, %v2424_v48  ;;  %v1867_v14 = vpop.f32.mrb[10].mxu1  ;;  %v2002_v12 = vld [vmem:[%s2678_s1 + $0x100] sm:$0xff]  }
 0x1f3   : > { %623 = vrot.lane.b32.xlu0 %v607_v10, %s2219_s20  ;;  %2066 = vtanh.f32 %v552_v11  ;;  %v555_v15 = vadd.f32 %v1867_v14, %v2424_v48  ;;  %v546_v16 = vpop.f32.mrb[11].mxu1  ;;  %v2000_v10 = vld [vmem:[%s2678_s1 + $0xf8] sm:$0xff]   ;;  %1872 = vmatprep.subr.bf16.mxu0 %v2002_v12  ;;  %v683_v14 = vlaneseq }
 0x1f4   : > { %2068 = vtanh.f32 %v544_v13  ;;  %v547_v17 = vadd.f32 %v546_v16, %v2424_v48  ;;  %v2001_v11 = vld [vmem:[%s2678_s1 + $0xb8] sm:$0xff]   ;;  %v2003_v13 = vld [vmem:[%s2678_s1 + $0x108] sm:$0xff]  }
 0x1f5   : > { %v2059_v20 = vpop.eup %2058  ;;  %2070 = vtanh.f32 %v555_v15  ;;  %v684_v15 = vshrl.u32 %v683_v14, 7 }
 0x1f6   : > { %v2061_v21 = vpop.eup %2060  ;;  %2072 = vtanh.f32 %v547_v17  ;;  %v1629_v17 = vld [vmem:[%s2680_s3 + $0x2] ss:$8 sm:$0x3] }
 0x1f7   : > { %v2063_v22 = vpop.eup %2062  ;;  %625 = vrot.lane.b32.xlu0 %v608_v8, %s2219_s20  ;;  %v1998_v8 = vld [vmem:[%s2678_s1 + $0xf0] sm:$0xff]   ;;  %v685_v16 = vsub.s32 0, %v684_v15 }
 0x1f8   : > { %v2065_v23 = vpop.eup %2064  ;;  %v610_v26 = vpack.c.bf16 %v2063_v22, %v2059_v20  ;;  %v1870_v27 = vpop.f32.mrb[12].mxu1  ;;  %v689_v20 = vsub.s32 1, %v684_v15 }
 0x1f9   : > { %v609_v28 = vpack.c.bf16 %v2065_v23, %v2061_v21  ;;  %v568_v29 = vadd.f32 %v1870_v27, %v2424_v48  ;;  %v559_v32 = vpop.f32.mrb[13].mxu1  ;;  %v2528_v21 = vrot.slane %v1629_v17, %v685_v16 }
 0x1fa   : > { %v560_v33 = vadd.f32 %v559_v32, %v2424_v48  ;;  %v1871_v35 = vpop.f32.mrb[14].mxu1  ;;  %v2530_v22 = vrot.slane %v1629_v17, %v689_v20 }
 0x1fb   : > { %627 = vrot.lane.b32.xlu1 %v609_v28, %s2219_s20  ;;  %2074 = vtanh.f32 %v568_v29  ;;  %v571_v36 = vadd.f32 %v1871_v35, %v2424_v48  ;;  %v562_v37 = vpop.f32.mrb[15].mxu1 }
 0x1fc   : > { %2076 = vtanh.f32 %v560_v33  ;;  %v563_v38 = vadd.f32 %v562_v37, %v2424_v48  ;;  %v1990_v48 = vld [vmem:[%s2678_s1 + $0xd0] sm:$0xff]  }
 0x1fd   : > { %v2067_v39 = vpop.eup %2066  ;;  %2078 = vtanh.f32 %v571_v36  ;;  %1716 = vmatprep.subr.bf16.mxu1 %v1990_v48 }
 0x1fe   : > { %v2069_v41 = vpop.eup %2068  ;;  %2080 = vtanh.f32 %v563_v38  ;;  %1717 = vmatpush3.bf16.msra.mxu1 %v1991_v49 }
 0x1ff   : > { %v2071_v40 = vpop.eup %2070  ;;  %629 = vrot.lane.b32.xlu1 %v610_v26, %s2219_s20  ;;  %1718 = vmatprep.subr.bf16.mxu1 %v1992_v50 }
 0x200   : > { %v2073_v42 = vpop.eup %2072  ;;  %v612_v43 = vpack.c.bf16 %v2071_v40, %v2067_v39 }
 0x201   : > { %v611_v44 = vpack.c.bf16 %v2073_v42, %v2069_v41 }
 0x202   : > { %1719 = vmatpush3.bf16.msra.mxu1 %v1993_v3 }
 0x203   : > { %633 = vrot.lane.b32.xlu1 %v612_v43, %s2219_s20  ;;  %631 = vrot.lane.b32.xlu0 %v611_v44, %s2219_s20 }
 0x204   : > { %1720 = vmatprep.subr.bf16.mxu1 %v1994_v4 }
 0x205   : > { %v2075_v45 = vpop.eup %2074 }
 0x206   : > { %v2077_v6 = vpop.eup %2076  ;;  %1721 = vmatpush3.bf16.msra.mxu1 %v1995_v5 }
 0x207   : > { %v2079_v18 = vpop.eup %2078 }
 0x208   : > { %v2081_v19 = vpop.eup %2080  ;;  %v614_v24 = vpack.c.bf16 %v2079_v18, %v2075_v45 }
 0x209   : > { %v613_v25 = vpack.c.bf16 %v2081_v19, %v2077_v6 }
 0x20a   : > { %637 = vrot.lane.b32.xlu1 %v614_v24, %s2219_s20 }
 0x20b   : > { %635 = vrot.lane.b32.xlu0 %v613_v25, %s2219_s20 }
 0x265   : > { %v624_v51 = vpop.permute.xlu0 %623 }
 0x266   : > { %648 = vst.msk [vmem:[#allocation2] sm:$0xff] %vm647_vm1, %v624_v51 }
 0x269   : > { %v626_v52 = vpop.permute.xlu0 %625 }
 0x26a   : > { %649 = vst.msk [vmem:[#allocation2 + $0x8] sm:$0xff] %vm647_vm1, %v626_v52 }
 0x26d   : > { %v628_v53 = vpop.permute.xlu1 %627  ;;  %v656_v54 = vld [vmem:[#allocation2] sm:$0xff] }
 0x26e   : > { %650 = vst.msk [vmem:[#allocation2 + $0x10] sm:$0xff] %vm647_vm1, %v628_v53  ;;  %806 = vmatmul.mubr.bf16.vlgmr.msra.gmra.mrb[16].mxu0 %v656_v54 }
 0x26f   : > { %815 = vmatprep.mubr.bf16.mxu0 %v2218_v46  ;;  %1873 = vmatpush3.bf16.msra.mxu0 %v2002_v12 }
 0x270   : > { %1874 = vmatprep.subr.bf16.mxu0 %v2003_v13 }
 0x271   : > { %v630_v55 = vpop.permute.xlu1 %629  ;;  %v657_v56 = vld [vmem:[#allocation2 + $0x8] sm:$0xff] }
 0x272   : > { %651 = vst.msk [vmem:[#allocation2 + $0x18] sm:$0xff] %vm647_vm1, %v630_v55 }
 0x273   : > { %1875 = vmatpush3.bf16.msra.mxu0 %v2003_v13 }
 0x275   : > { %v634_v57 = vpop.permute.xlu1 %633  ;;  %v632_v58 = vpop.permute.xlu0 %631  ;;  %v658_v60 = vld [vmem:[#allocation2 + $0x10] sm:$0xff] }
 0x276   : > { %816 = vmatmul.mubr.bf16.gmra.mrb[20].mxu0 %v657_v56  ;;  %653 = vst.msk [vmem:[#allocation2 + $0x28] sm:$0xff] %vm647_vm1, %v634_v57  ;;  %652 = vst.msk [vmem:[#allocation2 + $0x20] sm:$0xff] %vm647_vm1, %v632_v58 }
 0x277   : > { %825 = vmatprep.mubr.bf16.mxu0 %v2218_v46 }
 0x279   : > { %v659_v62 = vld [vmem:[#allocation2 + $0x18] sm:$0xff] }
 0x27c   : > { %v638_v59 = vpop.permute.xlu1 %637 }
 0x27d   : > { %655 = vst.msk [vmem:[#allocation2 + $0x38] sm:$0xff] %vm647_vm1, %v638_v59  ;;  %v636_v61 = vpop.permute.xlu0 %635  ;;  %v660_v63 = vld [vmem:[#allocation2 + $0x20] sm:$0xff]  ;;  %v661_v0 = vld [vmem:[#allocation2 + $0x28] sm:$0xff] }
 0x27e   : > { %826 = vmatmul.mubr.bf16.gmra.mrb[24].mxu0 %v658_v60  ;;  %654 = vst.msk [vmem:[#allocation2 + $0x30] sm:$0xff] %vm647_vm1, %v636_v61 }
 0x27f   : > { %835 = vmatprep.mubr.bf16.mxu0 %v2218_v46 }
 0x284   : > { %v663_v2 = vld [vmem:[#allocation2 + $0x38] sm:$0xff] }
 0x285   : > { %v662_v1 = vld [vmem:[#allocation2 + $0x30] sm:$0xff] }
 0x286   : > { %836 = vmatmul.mubr.bf16.gmra.mrb[28].mxu0 %v659_v62 }
 0x287   : > { %845 = vmatprep.mubr.bf16.mxu0 %v2218_v46 }
 0x28e   : > { %846 = vmatmul.mubr.bf16.gmra.mrb[32].mxu0 %v660_v63 }
 0x28f   : > { %855 = vmatprep.mubr.bf16.mxu0 %v2218_v46 }
 0x296   : > { %856 = vmatmul.mubr.bf16.gmra.mrb[36].mxu0 %v661_v0 }
 0x297   : > { %865 = vmatprep.mubr.bf16.mxu0 %v2218_v46 }
 0x29e   : > { %866 = vmatmul.mubr.bf16.gmra.mrb[40].mxu0 %v662_v1 }
 0x29f   : > { %875 = vmatprep.mubr.bf16.mxu0 %v2218_v46  ;;  %v1996_v46 = vld [vmem:[%s2678_s1 + $0xe8] sm:$0xff]  }
 0x2a0   : > { %1722 = vmatprep.subr.bf16.mxu1 %v1996_v46 }
 0x2a1   : > { %1723 = vmatpush3.bf16.msra.mxu1 %v1997_v7 }
 0x2a2   : > { %1724 = vmatprep.subr.bf16.mxu1 %v1998_v8 }
 0x2a5   : > { %1725 = vmatpush3.bf16.msra.mxu1 %v1999_v9 }
 0x2a6   : > { %876 = vmatmul.mubr.bf16.gmra.mrb[44].mxu0 %v663_v2  ;;  %1726 = vmatprep.subr.bf16.mxu1 %v2000_v10 }
 0x2a9   : > { %1727 = vmatpush3.bf16.msra.mxu1 %v2001_v11 }
 0x341   : > { %v807_v23 = vpop.f32.mrb[16].mxu0 }
 0x342   : > { %v808_v26 = vadd.f32 %v807_v23, %v2528_v21  ;;  %v809_v27 = vpop.f32.mrb[17].mxu0 }
 0x343   : > { %v810_v28 = vadd.f32 %v809_v27, %v2530_v22  ;;  %v811_v29 = vpop.f32.mrb[18].mxu0 }
 0x344   : > { %2082 = vtanh.f32 %v808_v26  ;;  %v812_v32 = vadd.f32 %v811_v29, %v2528_v21  ;;  %v813_v33 = vpop.f32.mrb[19].mxu0 }
 0x345   : > { %2084 = vtanh.f32 %v810_v28  ;;  %v814_v35 = vadd.f32 %v813_v33, %v2530_v22 }
 0x346   : > { %2086 = vtanh.f32 %v812_v32 }
 0x347   : > { %2088 = vtanh.f32 %v814_v35 }
 0x349   : > { %v817_v36 = vpop.f32.mrb[20].mxu0 }
 0x34a   : > { %v818_v37 = vadd.f32 %v817_v36, %v2528_v21  ;;  %v819_v38 = vpop.f32.mrb[21].mxu0 }
 0x34b   : > { %v820_v39 = vadd.f32 %v819_v38, %v2530_v22  ;;  %v821_v41 = vpop.f32.mrb[22].mxu0 }
 0x34c   : > { %2090 = vtanh.f32 %v818_v37  ;;  %v822_v40 = vadd.f32 %v821_v41, %v2528_v21  ;;  %v823_v42 = vpop.f32.mrb[23].mxu0 }
 0x34d   : > { %2092 = vtanh.f32 %v820_v39  ;;  %v824_v43 = vadd.f32 %v823_v42, %v2530_v22 }
 0x34e   : > { %v2083_v44 = vpop.eup %2082  ;;  %2094 = vtanh.f32 %v822_v40 }
 0x34f   : > { %v2085_v45 = vpop.eup %2084  ;;  %2096 = vtanh.f32 %v824_v43 }
 0x350   : > { %v2087_v6 = vpop.eup %2086 }
 0x351   : > { %v2089_v18 = vpop.eup %2088  ;;  %v827_v19 = vpop.f32.mrb[24].mxu0  ;;  %v918_v24 = vpack.c.bf16 %v2087_v6, %v2083_v44 }
 0x352   : > { %v828_v25 = vadd.f32 %v827_v19, %v2528_v21  ;;  %v829_v30 = vpop.f32.mrb[25].mxu0  ;;  %v919_v31 = vpack.c.bf16 %v2089_v18, %v2085_v45 }
 0x353   : > { %v830_v34 = vadd.f32 %v829_v30, %v2530_v22  ;;  %v831_v47 = vpop.f32.mrb[26].mxu0 }
 0x354   : > { %2098 = vtanh.f32 %v828_v25  ;;  %v832_v48 = vadd.f32 %v831_v47, %v2528_v21  ;;  %v833_v49 = vpop.f32.mrb[27].mxu0  ;;  %1095 = vmatprep.mubr.bf16.mxu1 %v919_v31 }
 0x355   : > { %2100 = vtanh.f32 %v830_v34  ;;  %v834_v50 = vadd.f32 %v833_v49, %v2530_v22  ;;  %1096 = vmatmul.mubr.bf16.vlgmr.msra.gmra.mrb[16].mxu1 %v918_v24 }
 0x356   : > { %v2091_v51 = vpop.eup %2090  ;;  %2102 = vtanh.f32 %v832_v48 }
 0x357   : > { %v2093_v52 = vpop.eup %2092  ;;  %2104 = vtanh.f32 %v834_v50 }
 0x358   : > { %v2095_v53 = vpop.eup %2094 }
 0x359   : > { %v2097_v54 = vpop.eup %2096  ;;  %v837_v55 = vpop.f32.mrb[28].mxu0  ;;  %v920_v56 = vpack.c.bf16 %v2095_v53, %v2091_v51 }
 0x35a   : > { %v838_v57 = vadd.f32 %v837_v55, %v2528_v21  ;;  %v839_v58 = vpop.f32.mrb[29].mxu0  ;;  %v921_v59 = vpack.c.bf16 %v2097_v54, %v2093_v52 }
 0x35b   : > { %v840_v60 = vadd.f32 %v839_v58, %v2530_v22  ;;  %v841_v61 = vpop.f32.mrb[30].mxu0 }
 0x35c   : > { %2106 = vtanh.f32 %v838_v57  ;;  %v842_v62 = vadd.f32 %v841_v61, %v2528_v21  ;;  %v843_v63 = vpop.f32.mrb[31].mxu0  ;;  %1103 = vmatprep.mubr.bf16.mxu1 %v921_v59 }
 0x35d   : > { %2108 = vtanh.f32 %v840_v60  ;;  %v844_v0 = vadd.f32 %v843_v63, %v2530_v22  ;;  %1104 = vmatmul.mubr.bf16.gmra.mrb[20].mxu1 %v920_v56 }
 0x35e   : > { %v2099_v1 = vpop.eup %2098  ;;  %2110 = vtanh.f32 %v842_v62 }
 0x35f   : > { %v2101_v2 = vpop.eup %2100  ;;  %2112 = vtanh.f32 %v844_v0 }
 0x360   : > { %v2103_v3 = vpop.eup %2102 }
 0x361   : > { %v2105_v4 = vpop.eup %2104  ;;  %v847_v5 = vpop.f32.mrb[32].mxu0  ;;  %v922_v46 = vpack.c.bf16 %v2103_v3, %v2099_v1 }
 0x362   : > { %v848_v7 = vadd.f32 %v847_v5, %v2528_v21  ;;  %v849_v8 = vpop.f32.mrb[33].mxu0  ;;  %v923_v9 = vpack.c.bf16 %v2105_v4, %v2101_v2 }
 0x363   : > { %v850_v10 = vadd.f32 %v849_v8, %v2530_v22  ;;  %v851_v11 = vpop.f32.mrb[34].mxu0  ;;  %v2007_v8 = vld [vmem:[%s2678_s1 + $0x128] sm:$0xff]  }
 0x364   : > { %2114 = vtanh.f32 %v848_v7  ;;  %v852_v12 = vadd.f32 %v851_v11, %v2528_v21  ;;  %v853_v13 = vpop.f32.mrb[35].mxu0  ;;  %1111 = vmatprep.mubr.bf16.mxu1 %v923_v9  ;;  %v2006_v7 = vld [vmem:[%s2678_s1 + $0x120] sm:$0xff]   ;;  %v2008_v9 = vld [vmem:[%s2678_s1 + $0x130] sm:$0xff]  }
 0x365   : > { %2116 = vtanh.f32 %v850_v10  ;;  %v854_v14 = vadd.f32 %v853_v13, %v2530_v22  ;;  %1112 = vmatmul.mubr.bf16.gmra.mrb[24].mxu1 %v922_v46  ;;  %v2005_v46 = vld [vmem:[%s2678_s1 + $0x118] sm:$0xff]   ;;  %v2010_v11 = vld [vmem:[%s2678_s1 + $0x140] sm:$0xff]   ;;  %v2012_v13 = vld [vmem:[%s2678_s1 + $0x150] sm:$0xff]  }
 0x366   : > { %v2107_v15 = vpop.eup %2106  ;;  %2118 = vtanh.f32 %v852_v12  ;;  %v2009_v10 = vld [vmem:[%s2678_s1 + $0x138] sm:$0xff]   ;;  %v2011_v12 = vld [vmem:[%s2678_s1 + $0x148] sm:$0xff]   ;;  %1904 = vmatprep.subr.bf16.mxu1 %v2010_v11 }
 0x367   : > { %v2109_v16 = vpop.eup %2108  ;;  %2120 = vtanh.f32 %v854_v14  ;;  %1905 = vmatpush3.bf16.msra.mxu1 %v2010_v11 }
 0x368   : > { %v2111_v17 = vpop.eup %2110  ;;  %1906 = vmatprep.subr.bf16.mxu1 %v2011_v12 }
 0x369   : > { %v2113_v20 = vpop.eup %2112  ;;  %v857_v23 = vpop.f32.mrb[36].mxu0  ;;  %v924_v26 = vpack.c.bf16 %v2111_v17, %v2107_v15  ;;  %v2594_v15 = vld [vmem:[%s2680_s3 + $0x3] ss:$0 sm:$0xff] }
 0x36a   : > { %v858_v27 = vadd.f32 %v857_v23, %v2528_v21  ;;  %v859_v28 = vpop.f32.mrb[37].mxu0  ;;  %v925_v29 = vpack.c.bf16 %v2113_v20, %v2109_v16 }
 0x36b   : > { %v860_v32 = vadd.f32 %v859_v28, %v2530_v22  ;;  %v861_v33 = vpop.f32.mrb[38].mxu0  ;;  %1907 = vmatpush3.bf16.msra.mxu1 %v2011_v12 }
 0x36c   : > { %2122 = vtanh.f32 %v858_v27  ;;  %v862_v35 = vadd.f32 %v861_v33, %v2528_v21  ;;  %v863_v36 = vpop.f32.mrb[39].mxu0  ;;  %1119 = vmatprep.mubr.bf16.mxu1 %v925_v29  ;;  %1908 = vmatprep.subr.bf16.mxu1 %v2012_v13 }
 0x36d   : > { %2124 = vtanh.f32 %v860_v32  ;;  %v864_v37 = vadd.f32 %v863_v36, %v2530_v22  ;;  %1120 = vmatmul.mubr.bf16.gmra.mrb[28].mxu1 %v924_v26 }
 0x36e   : > { %v2115_v38 = vpop.eup %2114  ;;  %2126 = vtanh.f32 %v862_v35 }
 0x36f   : > { %v2117_v39 = vpop.eup %2116  ;;  %2128 = vtanh.f32 %v864_v37  ;;  %1909 = vmatpush3.bf16.msra.mxu1 %v2012_v13 }
 0x370   : > { %v2119_v41 = vpop.eup %2118 }
 0x371   : > { %v2121_v40 = vpop.eup %2120  ;;  %v867_v42 = vpop.f32.mrb[40].mxu0  ;;  %v926_v43 = vpack.c.bf16 %v2119_v41, %v2115_v38 }
 0x372   : > { %v868_v44 = vadd.f32 %v867_v42, %v2528_v21  ;;  %v869_v45 = vpop.f32.mrb[41].mxu0  ;;  %v927_v6 = vpack.c.bf16 %v2121_v40, %v2117_v39 }
 0x373   : > { %v870_v18 = vadd.f32 %v869_v45, %v2530_v22  ;;  %v871_v19 = vpop.f32.mrb[42].mxu0 }
 0x374   : > { %2130 = vtanh.f32 %v868_v44  ;;  %v872_v24 = vadd.f32 %v871_v19, %v2528_v21  ;;  %v873_v25 = vpop.f32.mrb[43].mxu0  ;;  %1127 = vmatprep.mubr.bf16.mxu1 %v927_v6 }
 0x375   : > { %2132 = vtanh.f32 %v870_v18  ;;  %v874_v30 = vadd.f32 %v873_v25, %v2530_v22  ;;  %1128 = vmatmul.mubr.bf16.gmra.mrb[32].mxu1 %v926_v43 }
 0x376   : > { %v2123_v31 = vpop.eup %2122  ;;  %2134 = vtanh.f32 %v872_v24 }
 0x377   : > { %v2125_v34 = vpop.eup %2124  ;;  %2136 = vtanh.f32 %v874_v30 }
 0x378   : > { %v2127_v47 = vpop.eup %2126 }
 0x379   : > { %v2129_v48 = vpop.eup %2128  ;;  %v877_v49 = vpop.f32.mrb[44].mxu0  ;;  %v928_v50 = vpack.c.bf16 %v2127_v47, %v2123_v31 }
 0x37a   : > { %v878_v51 = vadd.f32 %v877_v49, %v2528_v21  ;;  %v879_v52 = vpop.f32.mrb[45].mxu0  ;;  %v929_v53 = vpack.c.bf16 %v2129_v48, %v2125_v34 }
 0x37b   : > { %v880_v54 = vadd.f32 %v879_v52, %v2530_v22  ;;  %v881_v55 = vpop.f32.mrb[46].mxu0 }
 0x37c   : > { %2138 = vtanh.f32 %v878_v51  ;;  %v882_v56 = vadd.f32 %v881_v55, %v2528_v21  ;;  %v883_v57 = vpop.f32.mrb[47].mxu0  ;;  %1135 = vmatprep.mubr.bf16.mxu1 %v929_v53 }
 0x37d   : > { %2140 = vtanh.f32 %v880_v54  ;;  %v884_v58 = vadd.f32 %v883_v57, %v2530_v22  ;;  %1136 = vmatmul.mubr.bf16.gmra.mrb[36].mxu1 %v928_v50  ;;  %v2004_v22 = vld [vmem:[%s2678_s1 + $0x110] sm:$0xff]  }
 0x37e   : > { %v2131_v59 = vpop.eup %2130  ;;  %2142 = vtanh.f32 %v882_v56  ;;  %1876 = vmatprep.subr.bf16.mxu0 %v2004_v22 }
 0x37f   : > { %v2133_v60 = vpop.eup %2132  ;;  %2144 = vtanh.f32 %v884_v58  ;;  %1877 = vmatpush3.bf16.msra.mxu0 %v2004_v22 }
 0x380   : > { %v2135_v61 = vpop.eup %2134  ;;  %1878 = vmatprep.subr.bf16.mxu0 %v2005_v46 }
 0x381   : > { %v2137_v62 = vpop.eup %2136  ;;  %v930_v63 = vpack.c.bf16 %v2135_v61, %v2131_v59 }
 0x382   : > { %v931_v0 = vpack.c.bf16 %v2137_v62, %v2133_v60 }
 0x383   : > { %1879 = vmatpush3.bf16.msra.mxu0 %v2005_v46 }
 0x384   : > { %1143 = vmatprep.mubr.bf16.mxu1 %v931_v0  ;;  %1880 = vmatprep.subr.bf16.mxu0 %v2006_v7 }
 0x385   : > { %1144 = vmatmul.mubr.bf16.gmra.mrb[40].mxu1 %v930_v63 }
 0x386   : > { %v2139_v1 = vpop.eup %2138 }
 0x387   : > { %v2141_v2 = vpop.eup %2140  ;;  %1881 = vmatpush3.bf16.msra.mxu0 %v2006_v7 }
 0x388   : > { %v2143_v3 = vpop.eup %2142  ;;  %1882 = vmatprep.subr.bf16.mxu0 %v2007_v8 }
 0x389   : > { %v2145_v21 = vpop.eup %2144  ;;  %v932_v4 = vpack.c.bf16 %v2143_v3, %v2139_v1 }
 0x38a   : > { %v933_v5 = vpack.c.bf16 %v2145_v21, %v2141_v2 }
 0x38b   : > { %1883 = vmatpush3.bf16.msra.mxu0 %v2007_v8 }
 0x38c   : > { %1151 = vmatprep.mubr.bf16.mxu1 %v933_v5  ;;  %1884 = vmatprep.subr.bf16.mxu0 %v2008_v9 }
 0x38d   : > { %1152 = vmatmul.mubr.bf16.gmra.mrb[44].mxu1 %v932_v4 }
 0x38f   : > { %1885 = vmatpush3.bf16.msra.mxu0 %v2008_v9 }
 0x390   : > { %1886 = vmatprep.subr.bf16.mxu0 %v2009_v10 }
 0x393   : > { %1887 = vmatpush3.bf16.msra.mxu0 %v2009_v10 }
 0x428   : > { %v1728_v14 = vpop.f32.mrb[16].mxu1 }
 0x429   : > { %v1729_v16 = vpop.f32.mrb[17].mxu1 }
 0x42a   : > { %v1730_v17 = vadd.f32 %v1729_v16, %v1728_v14  ;;  %v1731_v20 = vpop.f32.mrb[18].mxu1 }
 0x42b   : > { %v1732_v23 = vpop.f32.mrb[19].mxu1 }
 0x42c   : > { %v1098_v26 = vadd.f32 %v1730_v17, %v2594_v15  ;;  %v1733_v27 = vadd.f32 %v1732_v23, %v1731_v20 }
 0x42e   : > { %v1101_v28 = vadd.f32 %v1733_v27, %v2594_v15  ;;  %2146 = vtanh.f32 %v1098_v26 }
 0x430   : > { %2148 = vtanh.f32 %v1101_v28  ;;  %v1734_v29 = vpop.f32.mrb[20].mxu1 }
 0x431   : > { %v1735_v32 = vpop.f32.mrb[21].mxu1 }
 0x432   : > { %v1736_v33 = vadd.f32 %v1735_v32, %v1734_v29  ;;  %v1737_v35 = vpop.f32.mrb[22].mxu1 }
 0x433   : > { %v1738_v36 = vpop.f32.mrb[23].mxu1 }
 0x434   : > { %v1106_v37 = vadd.f32 %v1736_v33, %v2594_v15  ;;  %v1739_v38 = vadd.f32 %v1738_v36, %v1737_v35 }
 0x436   : > { %v1109_v39 = vadd.f32 %v1739_v38, %v2594_v15  ;;  %2150 = vtanh.f32 %v1106_v37 }
 0x438   : > { %2152 = vtanh.f32 %v1109_v39  ;;  %v1740_v41 = vpop.f32.mrb[24].mxu1  ;;  %v2147_v40 = vpop.eup %2146 }
 0x439   : > { %v1741_v42 = vpop.f32.mrb[25].mxu1 }
 0x43a   : > { %v2149_v43 = vpop.eup %2148  ;;  %v1742_v44 = vadd.f32 %v1741_v42, %v1740_v41  ;;  %v1743_v45 = vpop.f32.mrb[26].mxu1 }
 0x43b   : > { %v1744_v6 = vpop.f32.mrb[27].mxu1  ;;  %v1176_v18 = vpack.c.bf16 %v2149_v43, %v2147_v40 }
 0x43c   : > { %v1114_v19 = vadd.f32 %v1742_v44, %v2594_v15  ;;  %v1745_v24 = vadd.f32 %v1744_v6, %v1743_v45 }
 0x43d   : > { %1888 = vmatprep.mubr.bf16.mxu0 %v1176_v18 }
 0x43e   : > { %v1117_v25 = vadd.f32 %v1745_v24, %v2594_v15  ;;  %2154 = vtanh.f32 %v1114_v19  ;;  %v2013_v24 = vld [vmem:[%s2678_s1 + $0x158] sm:$0xff]  }
 0x43f   : > { %1910 = vmatprep.subr.bf16.mxu1 %v2013_v24 }
 0x440   : > { %2156 = vtanh.f32 %v1117_v25  ;;  %v1746_v30 = vpop.f32.mrb[28].mxu1  ;;  %v2151_v31 = vpop.eup %2150  ;;  %1911 = vmatpush3.bf16.msra.mxu1 %v2013_v24  ;;  %v2015_v25 = vld [vmem:[%s2678_s1 + $0x168] sm:$0xff]  }
 0x441   : > { %v1747_v34 = vpop.f32.mrb[29].mxu1 }
 0x442   : > { %v2153_v47 = vpop.eup %2152  ;;  %v1748_v48 = vadd.f32 %v1747_v34, %v1746_v30  ;;  %v1749_v49 = vpop.f32.mrb[30].mxu1  ;;  %v2016_v30 = vld [vmem:[%s2678_s1 + $0x170] sm:$0xff]   ;;  %v2630_v34 = vld [vmem:[%s2680_s3 + $0x4] ss:$0 sm:$0xff] }
 0x443   : > { %v1750_v50 = vpop.f32.mrb[31].mxu1  ;;  %v1177_v51 = vpack.c.bf16 %v2153_v47, %v2151_v31  ;;  %v2017_v31 = vld [vmem:[%s2678_s1 + $0x178] sm:$0xff]  }
 0x444   : > { %v1122_v52 = vadd.f32 %v1748_v48, %v2594_v15  ;;  %v1751_v53 = vadd.f32 %v1750_v50, %v1749_v49 }
 0x445   : > { %1889 = vmatmul.mubr.bf16.vlgmr.msra.gmra.mrb[48].mxu0 %v1177_v51 }
 0x446   : > { %v1125_v54 = vadd.f32 %v1751_v53, %v2594_v15  ;;  %2158 = vtanh.f32 %v1122_v52 }
 0x448   : > { %2160 = vtanh.f32 %v1125_v54  ;;  %v1752_v55 = vpop.f32.mrb[32].mxu1  ;;  %v2155_v56 = vpop.eup %2154 }
 0x449   : > { %v1753_v57 = vpop.f32.mrb[33].mxu1 }
 0x44a   : > { %v2157_v58 = vpop.eup %2156  ;;  %v1754_v59 = vadd.f32 %v1753_v57, %v1752_v55  ;;  %v1755_v60 = vpop.f32.mrb[34].mxu1 }
 0x44b   : > { %v1756_v61 = vpop.f32.mrb[35].mxu1  ;;  %v1178_v62 = vpack.c.bf16 %v2157_v58, %v2155_v56 }
 0x44c   : > { %v1130_v63 = vadd.f32 %v1754_v59, %v2594_v15  ;;  %v1757_v0 = vadd.f32 %v1756_v61, %v1755_v60 }
 0x44d   : > { %1892 = vmatprep.mubr.bf16.mxu0 %v1178_v62 }
 0x44e   : > { %v1133_v1 = vadd.f32 %v1757_v0, %v2594_v15  ;;  %2162 = vtanh.f32 %v1130_v63 }
 0x450   : > { %2164 = vtanh.f32 %v1133_v1  ;;  %v1758_v2 = vpop.f32.mrb[36].mxu1  ;;  %v2159_v3 = vpop.eup %2158 }
 0x451   : > { %v1759_v21 = vpop.f32.mrb[37].mxu1 }
 0x452   : > { %v2161_v4 = vpop.eup %2160  ;;  %v1760_v5 = vadd.f32 %v1759_v21, %v1758_v2  ;;  %v1761_v22 = vpop.f32.mrb[38].mxu1 }
 0x453   : > { %v1762_v46 = vpop.f32.mrb[39].mxu1  ;;  %v1179_v7 = vpack.c.bf16 %v2161_v4, %v2159_v3 }
 0x454   : > { %v1138_v8 = vadd.f32 %v1760_v5, %v2594_v15  ;;  %v1763_v9 = vadd.f32 %v1762_v46, %v1761_v22 }
 0x455   : > { %1893 = vmatmul.mubr.bf16.gmra.mrb[52].mxu0 %v1179_v7 }
 0x456   : > { %v1141_v10 = vadd.f32 %v1763_v9, %v2594_v15  ;;  %2166 = vtanh.f32 %v1138_v8 }
 0x458   : > { %2168 = vtanh.f32 %v1141_v10  ;;  %v1764_v11 = vpop.f32.mrb[40].mxu1  ;;  %v2163_v12 = vpop.eup %2162 }
 0x459   : > { %v1765_v13 = vpop.f32.mrb[41].mxu1 }
 0x45a   : > { %v2165_v14 = vpop.eup %2164  ;;  %v1766_v16 = vadd.f32 %v1765_v13, %v1764_v11  ;;  %v1767_v17 = vpop.f32.mrb[42].mxu1 }
 0x45b   : > { %v1768_v20 = vpop.f32.mrb[43].mxu1  ;;  %v1180_v23 = vpack.c.bf16 %v2165_v14, %v2163_v12 }
 0x45c   : > { %v1146_v26 = vadd.f32 %v1766_v16, %v2594_v15  ;;  %v1769_v27 = vadd.f32 %v1768_v20, %v1767_v17 }
 0x45d   : > { %1896 = vmatprep.mubr.bf16.mxu0 %v1180_v23 }
 0x45e   : > { %v1149_v28 = vadd.f32 %v1769_v27, %v2594_v15  ;;  %2170 = vtanh.f32 %v1146_v26 }
 0x460   : > { %2172 = vtanh.f32 %v1149_v28  ;;  %v1770_v29 = vpop.f32.mrb[44].mxu1  ;;  %v2167_v32 = vpop.eup %2166 }
 0x461   : > { %v1771_v33 = vpop.f32.mrb[45].mxu1 }
 0x462   : > { %v2169_v35 = vpop.eup %2168  ;;  %v1772_v36 = vadd.f32 %v1771_v33, %v1770_v29  ;;  %v1773_v37 = vpop.f32.mrb[46].mxu1 }
 0x463   : > { %v1774_v38 = vpop.f32.mrb[47].mxu1  ;;  %v1181_v39 = vpack.c.bf16 %v2169_v35, %v2167_v32 }
 0x464   : > { %v1154_v41 = vadd.f32 %v1772_v36, %v2594_v15  ;;  %v1775_v40 = vadd.f32 %v1774_v38, %v1773_v37 }
 0x465   : > { %1897 = vmatmul.mubr.bf16.gmra.mrb[56].mxu0 %v1181_v39 }
 0x466   : > { %v1157_v42 = vadd.f32 %v1775_v40, %v2594_v15  ;;  %2174 = vtanh.f32 %v1154_v41  ;;  %v2014_v15 = vld [vmem:[%s2678_s1 + $0x160] sm:$0xff]  }
 0x467   : > { %1912 = vmatprep.subr.bf16.mxu1 %v2014_v15 }
 0x468   : > { %2176 = vtanh.f32 %v1157_v42  ;;  %v2171_v43 = vpop.eup %2170  ;;  %1913 = vmatpush3.bf16.msra.mxu1 %v2014_v15 }
 0x469   : > { %1914 = vmatprep.subr.bf16.mxu1 %v2015_v25 }
 0x46a   : > { %v2173_v44 = vpop.eup %2172 }
 0x46b   : > { %v1182_v45 = vpack.c.bf16 %v2173_v44, %v2171_v43 }
 0x46c   : > { %1915 = vmatpush3.bf16.msra.mxu1 %v2015_v25 }
 0x46d   : > { %1900 = vmatprep.mubr.bf16.mxu0 %v1182_v45  ;;  %1916 = vmatprep.subr.bf16.mxu1 %v2016_v30 }
 0x470   : > { %v2175_v6 = vpop.eup %2174  ;;  %1917 = vmatpush3.bf16.msra.mxu1 %v2016_v30 }
 0x471   : > { %1918 = vmatprep.subr.bf16.mxu1 %v2017_v31 }
 0x472   : > { %v2177_v18 = vpop.eup %2176 }
 0x473   : > { %v1183_v19 = vpack.c.bf16 %v2177_v18, %v2175_v6  ;;  %v1386_v18 = vld [vmem:[%s2680_s3 + $0x5] ss:$0 sm:$0xff] }
 0x474   : > { %1919 = vmatpush3.bf16.msra.mxu1 %v2017_v31 }
 0x475   : > { %1901 = vmatmul.mubr.bf16.gmra.mrb[60].mxu0 %v1183_v19 }
 0x518   : > { %v1890_v47 = vpop.f32.mrb[48].mxu0 }
 0x519   : > { %v1292_v48 = vadd.f32 %v1890_v47, %v2630_v34  ;;  %v1283_v49 = vpop.f32.mrb[49].mxu0 }
 0x51a   : > { %v1284_v50 = vadd.f32 %v1283_v49, %v2630_v34  ;;  %v1891_v51 = vpop.f32.mrb[50].mxu0 }
 0x51b   : > { %2178 = vtanh.f32 %v1292_v48  ;;  %v1295_v52 = vadd.f32 %v1891_v51, %v2630_v34  ;;  %v1286_v53 = vpop.f32.mrb[51].mxu0 }
 0x51c   : > { %2180 = vtanh.f32 %v1284_v50  ;;  %v1287_v54 = vadd.f32 %v1286_v53, %v2630_v34 }
 0x51d   : > { %2182 = vtanh.f32 %v1295_v52 }
 0x51e   : > { %2184 = vtanh.f32 %v1287_v54 }
 0x525   : > { %v2179_v55 = vpop.eup %2178 }
 0x526   : > { %v2181_v56 = vpop.eup %2180 }
 0x527   : > { %v2183_v57 = vpop.eup %2182 }
 0x528   : > { %v2185_v58 = vpop.eup %2184  ;;  %v1894_v59 = vpop.f32.mrb[52].mxu0  ;;  %v1363_v60 = vpack.c.bf16 %v2183_v57, %v2179_v55 }
 0x529   : > { %v1308_v61 = vadd.f32 %v1894_v59, %v2630_v34  ;;  %v1299_v62 = vpop.f32.mrb[53].mxu0  ;;  %v1362_v63 = vpack.c.bf16 %v2185_v58, %v2181_v56 }
 0x52a   : > { %v1300_v0 = vadd.f32 %v1299_v62, %v2630_v34  ;;  %v1895_v1 = vpop.f32.mrb[54].mxu0 }
 0x52b   : > { %2186 = vtanh.f32 %v1308_v61  ;;  %v1311_v2 = vadd.f32 %v1895_v1, %v2630_v34  ;;  %v1302_v3 = vpop.f32.mrb[55].mxu0  ;;  %1920 = vmatprep.mubr.bf16.mxu1 %v1362_v63 }
 0x52c   : > { %2188 = vtanh.f32 %v1300_v0  ;;  %v1303_v21 = vadd.f32 %v1302_v3, %v2630_v34  ;;  %1921 = vmatmul.mubr.bf16.vlgmr.msra.gmra.mrb[48].mxu1 %v1363_v60 }
 0x52d   : > { %2190 = vtanh.f32 %v1311_v2 }
 0x52e   : > { %2192 = vtanh.f32 %v1303_v21 }
 0x535   : > { %v2187_v4 = vpop.eup %2186 }
 0x536   : > { %v2189_v5 = vpop.eup %2188 }
 0x537   : > { %v2191_v22 = vpop.eup %2190 }
 0x538   : > { %v2193_v46 = vpop.eup %2192  ;;  %v1898_v7 = vpop.f32.mrb[56].mxu0  ;;  %v1365_v8 = vpack.c.bf16 %v2191_v22, %v2187_v4 }
 0x539   : > { %v1324_v9 = vadd.f32 %v1898_v7, %v2630_v34  ;;  %v1315_v10 = vpop.f32.mrb[57].mxu0  ;;  %v1364_v11 = vpack.c.bf16 %v2193_v46, %v2189_v5 }
 0x53a   : > { %v1316_v12 = vadd.f32 %v1315_v10, %v2630_v34  ;;  %v1899_v13 = vpop.f32.mrb[58].mxu0 }
 0x53b   : > { %2194 = vtanh.f32 %v1324_v9  ;;  %v1327_v14 = vadd.f32 %v1899_v13, %v2630_v34  ;;  %v1318_v16 = vpop.f32.mrb[59].mxu0  ;;  %1924 = vmatprep.mubr.bf16.mxu1 %v1364_v11 }
 0x53c   : > { %2196 = vtanh.f32 %v1316_v12  ;;  %v1319_v17 = vadd.f32 %v1318_v16, %v2630_v34  ;;  %1925 = vmatmul.mubr.bf16.gmra.mrb[52].mxu1 %v1365_v8 }
 0x53d   : > { %2198 = vtanh.f32 %v1327_v14 }
 0x53e   : > { %2200 = vtanh.f32 %v1319_v17 }
 0x545   : > { %v2195_v20 = vpop.eup %2194 }
 0x546   : > { %v2197_v23 = vpop.eup %2196 }
 0x547   : > { %v2199_v26 = vpop.eup %2198 }
 0x548   : > { %v2201_v27 = vpop.eup %2200  ;;  %v1902_v28 = vpop.f32.mrb[60].mxu0  ;;  %v1367_v29 = vpack.c.bf16 %v2199_v26, %v2195_v20 }
 0x549   : > { %v1340_v32 = vadd.f32 %v1902_v28, %v2630_v34  ;;  %v1331_v33 = vpop.f32.mrb[61].mxu0  ;;  %v1366_v35 = vpack.c.bf16 %v2201_v27, %v2197_v23 }
 0x54a   : > { %v1332_v36 = vadd.f32 %v1331_v33, %v2630_v34  ;;  %v1903_v37 = vpop.f32.mrb[62].mxu0 }
 0x54b   : > { %2202 = vtanh.f32 %v1340_v32  ;;  %v1343_v38 = vadd.f32 %v1903_v37, %v2630_v34  ;;  %v1334_v39 = vpop.f32.mrb[63].mxu0  ;;  %1928 = vmatprep.mubr.bf16.mxu1 %v1366_v35 }
 0x54c   : > { %2204 = vtanh.f32 %v1332_v36  ;;  %v1335_v41 = vadd.f32 %v1334_v39, %v2630_v34  ;;  %1929 = vmatmul.mubr.bf16.gmra.mrb[56].mxu1 %v1367_v29 }
 0x54d   : > { %2206 = vtanh.f32 %v1343_v38 }
 0x54e   : > { %2208 = vtanh.f32 %v1335_v41 }
 0x555   : > { %v2203_v40 = vpop.eup %2202 }
 0x556   : > { %v2205_v42 = vpop.eup %2204 }
 0x557   : > { %v2207_v43 = vpop.eup %2206 }
 0x558   : > { %v2209_v44 = vpop.eup %2208  ;;  %v1369_v45 = vpack.c.bf16 %v2207_v43, %v2203_v40 }
 0x559   : > { %v1368_v6 = vpack.c.bf16 %v2209_v44, %v2205_v42 }
 0x55b   : > { %1932 = vmatprep.mubr.bf16.mxu1 %v1368_v6 }
 0x55c   : > { %1933 = vmatmul.mubr.bf16.gmra.mrb[60].mxu1 %v1369_v45 }
 0x5ff   : > { %v1922_v19 = vpop.f32.mrb[48].mxu1 }
 0x600   : > { %v1478_v24 = vadd.f32 %v1922_v19, %v1386_v18  ;;  %v1469_v15 = vpop.f32.mrb[49].mxu1 }
 0x601   : > { %v1470_v25 = vadd.f32 %v1469_v15, %v1386_v18  ;;  %v1923_v30 = vpop.f32.mrb[50].mxu1 }
 0x602   : > { %1534 = vst [vmem:[%s2656_s27 + $0x10] sm:$0xff] %v1478_v24  ;;  %v1481_v31 = vadd.f32 %v1923_v30, %v1386_v18  ;;  %v1472_v34 = vpop.f32.mrb[51].mxu1 }
 0x603   : > { %1532 = vst [vmem:[%s2656_s27] sm:$0xff] %v1470_v25  ;;  %v1473_v47 = vadd.f32 %v1472_v34, %v1386_v18 }
 0x604   : > { %1535 = vst [vmem:[%s2656_s27 + $0x18] sm:$0xff] %v1481_v31 }
 0x605   : > { %1533 = vst [vmem:[%s2656_s27 + $0x8] sm:$0xff] %v1473_v47 }
 0x60f   : > { %v1926_v48 = vpop.f32.mrb[52].mxu1 }
 0x610   : > { %v1494_v49 = vadd.f32 %v1926_v48, %v1386_v18  ;;  %v1485_v50 = vpop.f32.mrb[53].mxu1 }
 0x611   : > { %v1486_v51 = vadd.f32 %v1485_v50, %v1386_v18  ;;  %v1927_v52 = vpop.f32.mrb[54].mxu1 }
 0x612   : > { %1538 = vst [vmem:[%s2656_s27 + $0x30] sm:$0xff] %v1494_v49  ;;  %v1497_v53 = vadd.f32 %v1927_v52, %v1386_v18  ;;  %v1488_v54 = vpop.f32.mrb[55].mxu1 }
 0x613   : > { %1536 = vst [vmem:[%s2656_s27 + $0x20] sm:$0xff] %v1486_v51  ;;  %v1489_v55 = vadd.f32 %v1488_v54, %v1386_v18 }
 0x614   : > { %1539 = vst [vmem:[%s2656_s27 + $0x38] sm:$0xff] %v1497_v53 }
 0x615   : > { %1537 = vst [vmem:[%s2656_s27 + $0x28] sm:$0xff] %v1489_v55 }
 0x61f   : > { %v1930_v56 = vpop.f32.mrb[56].mxu1 }
 0x620   : > { %v1510_v57 = vadd.f32 %v1930_v56, %v1386_v18  ;;  %v1501_v58 = vpop.f32.mrb[57].mxu1 }
 0x621   : > { %v1502_v59 = vadd.f32 %v1501_v58, %v1386_v18  ;;  %v1931_v60 = vpop.f32.mrb[58].mxu1 }
 0x622   : > { %1542 = vst [vmem:[%s2656_s27 + $0x50] sm:$0xff] %v1510_v57  ;;  %v1513_v61 = vadd.f32 %v1931_v60, %v1386_v18  ;;  %v1504_v62 = vpop.f32.mrb[59].mxu1 }
 0x623   : > { %1540 = vst [vmem:[%s2656_s27 + $0x40] sm:$0xff] %v1502_v59  ;;  %v1505_v63 = vadd.f32 %v1504_v62, %v1386_v18 }
 0x624   : > { %1543 = vst [vmem:[%s2656_s27 + $0x58] sm:$0xff] %v1513_v61 }
 0x625   : > { %1541 = vst [vmem:[%s2656_s27 + $0x48] sm:$0xff] %v1505_v63 }
 0x62f   : > { %v1934_v0 = vpop.f32.mrb[60].mxu1 }
 0x630   : > { %v1526_v1 = vadd.f32 %v1934_v0, %v1386_v18  ;;  %v1517_v2 = vpop.f32.mrb[61].mxu1 }
 0x631   : > { %v1518_v3 = vadd.f32 %v1517_v2, %v1386_v18  ;;  %v1935_v21 = vpop.f32.mrb[62].mxu1 }
 0x632   : > { %1546 = vst [vmem:[%s2656_s27 + $0x70] sm:$0xff] %v1526_v1  ;;  %v1529_v4 = vadd.f32 %v1935_v21, %v1386_v18  ;;  %v1520_v5 = vpop.f32.mrb[63].mxu1 }
 0x633   : > { %1544 = vst [vmem:[%s2656_s27 + $0x60] sm:$0xff] %v1518_v3  ;;  %v1521_v22 = vadd.f32 %v1520_v5, %v1386_v18 }
 0x634   : > { %1547 = vst [vmem:[%s2656_s27 + $0x78] sm:$0xff] %v1529_v4 }
 0x635   : > { %1545 = vst [vmem:[%s2656_s27 + $0x68] sm:$0xff] %v1521_v22 }
 0x636 PF: > { %s14_s15 = sadd.s32 1, %s2216_s15  }
 0x637   : > { %p11_p4 = scmp.ge.s32.totalorder %s14_s15, 4  }
 0x639   :  { %13 = sbr.rel (!%p11_p4) target bundleno = 1 (0x1), region = 67 }

</bundles_post_ra>
